<compile_context>
chip_gen: v7x
topology: tpu7x:2x2x1
jax: 0.10.0
libtpu: 0.0.40
codegen_flags: <defaults>
</compile_context>

<pallas_src>
import jax
import jax.numpy as jnp
from jax.experimental import pallas as pl
from jax.experimental.pallas import tpu as pltpu


def _sign_kernel(x_ref, o_ref):
    x = x_ref[...]
    # BNN sign: +1 for x >= 0 (including -0.0), -1 for x < 0. Constants built
    # in the I/O dtype so the select runs at native width with no trailing cast.
    one = jnp.ones((), dtype=o_ref.dtype)
    o_ref[...] = jnp.where(x >= 0, one, -one)


# Candidate lane widths (largest first); all multiples of 128.
_LANE_CANDIDATES = (8192, 4096, 2048, 1024, 512, 256, 128)
_MIN_GRID_STEPS = 4            # enforced for arrays > _MULTI_STEP_BYTES
_MULTI_STEP_BYTES = 1 << 20    # ~1 MiB


def _packing_rows(itemsize: int) -> int:
    """Sublane packing multiple: 8 for 32-bit, 16 for 16-bit, 32 for 8-bit."""
    return max(8, 32 // max(1, itemsize))


def _target_tile_bytes() -> int:
    """Per-buffer block budget, sized per TPU generation."""
    try:
        kind = jax.devices()[0].device_kind.lower()
    except Exception:  # pragma: no cover - defensive; keep a safe default
        kind = ""
    # v5e: 16 MiB scoped-VMEM default -> ~2 MiB/buffer (≈8 MiB in flight).
    if "v5 lite" in kind or "v5e" in kind or "v5lite" in kind:
        return 2 * 1024 * 1024
    # v6e / v7x (and newer): ~4 MiB/buffer (≈16 MiB in flight), amortizes the
    # fixed per-grid-step overhead at the higher HBM bandwidth.
    return 4 * 1024 * 1024


def _pick_layout(total: int, itemsize: int, tile_bytes: int):
    """Choose (lanes, rows, block_rows, padded_total) for a flat element count."""
    packing = _packing_rows(itemsize)
    total_bytes = total * itemsize
    want_multi = total_bytes > _MULTI_STEP_BYTES
    min_rows = packing * (_MIN_GRID_STEPS if want_multi else 1)

    lanes = None
    # Prefer a wide lane dim that divides `total` exactly (no pad copy) while
    # keeping enough rows for >= _MIN_GRID_STEPS pipelined blocks.
    for c in _LANE_CANDIDATES:
        if total % c == 0 and total // c >= min_rows:
            lanes = c
            break
    if lanes is None:
        for c in _LANE_CANDIDATES:
            if total % c == 0:
                lanes = c
                break
    if lanes is None:
        # Rare fallback: element count not a multiple of 128 -> pad flat tail.
        lanes = 128
        padded_total = -(-total // lanes) * lanes
    else:
        padded_total = total
    rows = padded_total // lanes

    # Tile rows so one buffer is ~tile_bytes, rounded to the packing multiple.
    block_rows = tile_bytes // (lanes * itemsize)
    block_rows = max(packing, (block_rows // packing) * packing)

    if want_multi:
        # Guarantee >= _MIN_GRID_STEPS blocks so DMA-in / compute / DMA-out
        # overlap and v7x can split the parallel axis across both TensorCores.
        max_block = (rows // _MIN_GRID_STEPS // packing) * packing
        if max_block >= packing:
            block_rows = min(block_rows, max_block)

    if block_rows >= rows:
        block_rows = rows          # full-extent dim is always legal
    return lanes, rows, block_rows, padded_total


def sign_bnn(x: jax.Array, *, donate: bool = False) -> jax.Array:
    """Apply BNN sign (sign(0) = +1) elementwise to an arbitrary-shaped array.

    Set donate=True only when the caller no longer needs `x`; the output then
    aliases the input's HBM buffer (no bandwidth change, lower peak memory).
    """
    orig_shape = x.shape
    orig_dtype = x.dtype
    total = x.size
    if total == 0:
        return x

    itemsize = jnp.dtype(orig_dtype).itemsize
    tile_bytes = _target_tile_bytes()
    lanes, rows, block_rows, padded_total = _pick_layout(total, itemsize, tile_bytes)

    flat = jnp.ravel(x)
    if padded_total != total:
        # Rare fallback path (element count not a multiple of 128); common
        # activation shapes never take it.
        # TODO(synk): handle the ragged tail in-kernel (masked store) to avoid
        # the pad + slice HBM round-trip on non-128-multiple element counts.
        flat = jnp.pad(flat, (0, padded_total - total))
    x2d = flat.reshape(rows, lanes)

    grid = (pl.cdiv(rows, block_rows),)   # partial last block is masked

    # In-flight VMEM: double-buffered input + output, plus headroom. Explicit
    # so larger blocks on v6e/v7x never trip the scoped-VMEM default.
    in_flight = 4 * block_rows * lanes * itemsize
    vmem_limit = min(64 << 20, max(16 << 20, in_flight + (8 << 20)))

    extra_kwargs = {}
    if donate:
        extra_kwargs["input_output_aliases"] = {0: 0}

    out2d = pl.pallas_call(
        _sign_kernel,
        out_shape=jax.ShapeDtypeStruct((rows, lanes), orig_dtype),
        grid_spec=pltpu.PrefetchScalarGridSpec(
            num_scalar_prefetch=0,
            grid=grid,
            in_specs=[pl.BlockSpec((block_rows, lanes), lambda i: (i, 0))],
            out_specs=pl.BlockSpec((block_rows, lanes), lambda i: (i, 0)),
        ),
        compiler_params=pltpu.CompilerParams(
            dimension_semantics=("parallel",),
            vmem_limit_bytes=vmem_limit,
        ),
        cost_estimate=pl.CostEstimate(
            flops=padded_total,
            transcendentals=0,
            bytes_accessed=2 * padded_total * itemsize,
        ),
        **extra_kwargs,
    )(x2d)

    if padded_total != total:
        out = out2d.reshape(padded_total)[:total].reshape(orig_shape)
    else:
        out = out2d.reshape(orig_shape)
    return out


if __name__ == "__main__":
    key = jax.random.PRNGKey(0)
    # Small conv-style activation: batch=2, channels=4, spatial=16x16 (NCHW)
    x = jax.random.normal(key, (2, 4, 16, 16), dtype=jnp.float32)

    y = jax.block_until_ready(sign_bnn(x))

    # Reference check in plain JAX (sign(0) = +1 convention)
    ref = jnp.where(x >= 0, 1.0, -1.0).astype(x.dtype)
    assert y.shape == x.shape and y.dtype == x.dtype
    assert bool(jnp.all(y == ref))

    print("KERNEL_OK")
</pallas_src>

<mosaic_0001>
module attributes {stable_mosaic.version = 11 : i64} {
  func.func @_sign_kernel(%arg0: i32, %arg1: memref<8x256xf32, #tpu.memory_space<vmem>>, %arg2: memref<8x256xf32, #tpu.memory_space<vmem>>) attributes {dimension_semantics = [#tpu.dimension_semantics<parallel>], iteration_bounds = array<i64: 1>, scalar_prefetch = 0 : i64, scratch_operands = 0 : i64, tpu.core_type = #tpu.core_type<tc>, window_params = [{transform_indices = @transform_0, window_bounds = array<i64: 8, 256>}, {transform_indices = @transform_1, window_bounds = array<i64: 8, 256>}]} {
    %c0 = arith.constant 0 : index
    %c0_0 = arith.constant 0 : index
    %0 = vector.load %arg1[%c0, %c0_0] : memref<8x256xf32, #tpu.memory_space<vmem>>, vector<8x256xf32>
    %cst = arith.constant 0.000000e+00 : f32
    %1 = vector.broadcast %cst : f32 to vector<8x256xf32>
    %2 = arith.cmpf oge, %0, %1 : vector<8x256xf32>
    %cst_1 = arith.constant 0.000000e+00 : f32
    %cst_2 = arith.constant 1.000000e+00 : f32
    %3 = arith.subf %cst_1, %cst_2 : f32
    %cst_3 = arith.constant 1.000000e+00 : f32
    %4 = vector.broadcast %cst_3 : f32 to vector<8x256xf32>
    %5 = vector.broadcast %3 : f32 to vector<8x256xf32>
    %6 = arith.select %2, %4, %5 : vector<8x256xi1>, vector<8x256xf32>
    %c0_4 = arith.constant 0 : index
    %c0_5 = arith.constant 0 : index
    %7 = vector.load %arg2[%c0_4, %c0_5] : memref<8x256xf32, #tpu.memory_space<vmem>>, vector<8x256xf32>
    tpu.vector_store %arg2[%c0_4, %c0_5], %6 {strides = array<i32>} : memref<8x256xf32, #tpu.memory_space<vmem>>, vector<8x256xf32>,
    return
  }
  func.func @transform_0(%arg0: i32) -> (i32, i32) {
    %c0_i32 = arith.constant 0 : i32
    %c0_i32_0 = arith.constant 0 : i32
    return %arg0, %c0_i32 : i32, i32
  }
  func.func @transform_1(%arg0: i32) -> (i32, i32) {
    %c0_i32 = arith.constant 0 : i32
    %c0_i32_0 = arith.constant 0 : i32
    return %arg0, %c0_i32 : i32, i32
  }
}

</mosaic_0001>

<bundles_post_ra>
// kernel: tpu_custom_call.1
= control target key start
LH: loop header
LB: loop body
LE: loop exit
PB: predicated region body
PF: predicated region fallthrough
CT: control target
= control target key end

     0   :  { %6 = vsyncpa [#allocation3], 0  ;;  %s132_s0 = inlined_call_operand.hbm [shape: f32[8,256], index: 0, kind: input, shape index: {}]   ;;  %s133_s1 = inlined_call_operand.hbm [shape: f32[8,256], index: 1, kind: output, shape index: {}]  }
   0x1   :  { %7 = vsyncpa [#allocation4], 0  ;;  %s95_s6 = smov [#allocation2]   ;;  %s47_s10 = scalar_lea.hbm %s132_s0, 256 }
   0x2   :  { %s14_s7 = sshll.u32 %s95_s6, 4  ;;  %p48_p0 = scmp.ne.s32.totalorder %s132_s0, %s47_s10  ;;  %s15_s7 = int_to_ptr.vmem [resolvable:$true] %s14_s7 }
   0x3   :  { %p51_p1 = scmp.lt.u32.totalorder %s47_s10, %s132_s0 }
   0x5   :  { %p53_p2 = pnand %p51_p1, %p48_p0 }
   0x7   :  { %56 = shalt.err (!%p53_p2)
}
   0x8   :  { %s57_s15 = scalar_lea.vmem %s15_s7, 256  ;;  %p62_p4 = scmp.lt.s32.totalorder %s15_s7, %s15_s7 }
   0x9   :  { %p58_p3 = scmp.ne.s32.totalorder %s15_s7, %s57_s15  ;;  %p63_p5 = scmp.lt.s32.totalorder %s57_s15, %s57_s15 }
   0xb   :  { %p64_p6 = por %p63_p5, %p62_p4 }
   0xd   :  { %p65_p7 = pnand %p64_p6, %p58_p3 }
   0xf   :  { %68 = shalt.err (!%p65_p7)
}
  0x10   :  { %17 = dma.hbm_to_vmem [thread:$0]  %s132_s0, 256, %s15_s7, [#allocation3]  }
  0x11   :  { %91 = dma.done.wait [#allocation3], 256  }
  0x12   :  { %92 = vsyncadd [#allocation3], 4294967040  ;;  %s96_s18 = smov [#allocation5]   ;;  %v21_v0 = vld [vmem:[#allocation2] sm:$0xff]  ;;  %v22_v1 = vld [vmem:[#allocation2 + $0x8] sm:$0xff]  ;;  %v97_v2 = vmov -1.0  }
  0x13   :  { %s35_s19 = sshll.u32 %s96_s18, 4  ;;  %vm23_vm0 = vcmp.ge.f32.partialorder %v21_v0, 0.0  ;;  %vm24_vm1 = vcmp.ge.f32.partialorder %v22_v1, 0.0  ;;  %s36_s19 = int_to_ptr.vmem [resolvable:$true] %s35_s19 }
  0x14   :  { %v25_v3 = vsel %vm23_vm0, 1.0, %v97_v2  ;;  %v26_v4 = vsel %vm24_vm1, 1.0, %v97_v2  ;;  %s69_s20 = scalar_lea.vmem %s36_s19, 256  ;;  %p74_p9 = scmp.lt.s32.totalorder %s36_s19, %s36_s19 }
  0x15   :  { %27 = vst [vmem:[#allocation5] sm:$0xff] %v25_v3  ;;  %28 = vst [vmem:[#allocation5 + $0x8] sm:$0xff] %v26_v4  ;;  %p70_p8 = scmp.ne.s32.totalorder %s36_s19, %s69_s20  ;;  %p75_p10 = scmp.lt.s32.totalorder %s69_s20, %s69_s20 }
  0x17   :  { %p76_p11 = por %p75_p10, %p74_p9 }
  0x19   :  { %p77_p12 = pnand %p76_p11, %p70_p8 }
  0x1b   :  { %80 = shalt.err (!%p77_p12)
}
  0x1c   :  { %s81_s22 = scalar_lea.hbm %s133_s1, 256 }
  0x1d   :  { %p82_p13 = scmp.ne.s32.totalorder %s133_s1, %s81_s22  ;;  %p85_p0 = scmp.lt.u32.totalorder %s81_s22, %s133_s1 }
  0x1f   :  { %p87_p1 = pnand %p85_p0, %p82_p13 }
  0x21   :  { %90 = shalt.err (!%p87_p1)
}
  0x22   :  { %38 = dma.vmem_to_hbm [thread:$0]  %s36_s19, 256, %s133_s1, [#allocation4]  }
  0x23   :  { %93 = dma.done.wait [#allocation4], 256  }
  0x24   :  { %94 = vsyncadd [#allocation4], 4294967040 }
  0x25   :  { %42 = vsyncpa [#allocation3], 1 }
  0x26   :  { %43 = vsyncpa [#allocation4], 1 }

</bundles_post_ra>
